<compile_context>
chip_gen: v5e
topology: v5e:2x2
jax: 0.10.0
libtpu: 0.0.40
codegen_flags: <defaults>
</compile_context>

<pallas_src>
import math

import jax
import jax.numpy as jnp
from jax.experimental import pallas as pl
from jax.experimental.pallas import tpu as pltpu

_MIB = 1024 * 1024


# ---------------------------------------------------------------------------
# Kernels
# ---------------------------------------------------------------------------
def _ffn_kernel_acc_out(x_ref, w13_ref, b13_ref, w2_ref, b2_ref, o_ref):
    """f32-output variant: o_ref doubles as the f32 accumulator (no scratch).

    x_ref   : (tm, D)     bf16 activation row-tile (resident across k)
    w13_ref : (D, 2*th)   bf16 fused [w1 | w3] hidden slice
    b13_ref : (1, 2*th)   f32  fused [b1 | b3] slice
    w2_ref  : (th, D)     bf16 down-proj slice
    b2_ref  : (1, D)      f32  down-proj bias (added once, at the last k)
    o_ref   : (tm, D)     f32  output row-tile (resident across k, used as accumulator)
    """
    k = pl.program_id(1)
    th = w2_ref.shape[0]

    @pl.when(k == 0)
    def _():
        o_ref[...] = jnp.zeros_like(o_ref)

    x = x_ref[...]
    # One wide MXU matmul for gate+up projections, f32 accumulate.
    h = jnp.dot(x, w13_ref[...], preferred_element_type=jnp.float32) + b13_ref[...]
    h1 = h[:, :th]                       # gate: w1 x + b1
    h3 = h[:, th:]                       # up:   w3 x + b3
    gated = (h1 * jax.nn.sigmoid(h1)) * h3   # SiLU gating in f32 (EUP + VPU)
    # Down-projection of this hidden slice, accumulated into the resident output.
    o_ref[...] += jnp.dot(gated.astype(w2_ref.dtype), w2_ref[...],
                          preferred_element_type=jnp.float32)

    @pl.when(k == pl.num_programs(1) - 1)
    def _():
        o_ref[...] += b2_ref[...]


def _ffn_kernel_scratch(x_ref, w13_ref, b13_ref, w2_ref, b2_ref, o_ref, acc_ref):
    """Narrow-output variant (e.g. bf16 output): f32 scratch accumulator, cast at end."""
    k = pl.program_id(1)
    th = w2_ref.shape[0]

    @pl.when(k == 0)
    def _():
        acc_ref[...] = jnp.zeros_like(acc_ref)

    x = x_ref[...]
    h = jnp.dot(x, w13_ref[...], preferred_element_type=jnp.float32) + b13_ref[...]
    h1 = h[:, :th]
    h3 = h[:, th:]
    gated = (h1 * jax.nn.sigmoid(h1)) * h3
    acc_ref[...] += jnp.dot(gated.astype(w2_ref.dtype), w2_ref[...],
                            preferred_element_type=jnp.float32)

    @pl.when(k == pl.num_programs(1) - 1)
    def _():
        o_ref[...] = (acc_ref[...] + b2_ref[...]).astype(o_ref.dtype)


# ---------------------------------------------------------------------------
# Generation-aware tile / VMEM selection
# ---------------------------------------------------------------------------
def _round_up(x, m):
    return ((x + m - 1) // m) * m


def _cdiv(a, b):
    return -(-a // b)


def _hw_params():
    """Return (vmem_limit_cap_bytes, tile_fit_budget_bytes, tm_cap)."""
    kind = ""
    try:
        kind = jax.devices()[0].device_kind.lower()
    except Exception:
        pass
    phys = None
    try:
        phys = int(getattr(pltpu.get_tpu_info(), "vmem_capacity_bytes"))
    except Exception:
        phys = None
    if phys is None:
        # Name sniffing fallback; default conservatively to the smallest (v7x) VMEM.
        phys = 128 * _MIB if ("v5" in kind or "v6" in kind) else 64 * _MIB

    if phys >= 128 * _MIB:
        # v5e / v6e: 128 MiB physical -> allow up to ~100 MiB scoped VMEM.
        cap = 100 * _MIB
        # v5e roofline knee ~240 FLOPs/weight-byte -> tm=256 is enough; v6e (~700) wants 512.
        tm_cap = 256 if "v5" in kind else 512
    else:
        # v7x: 64 MiB per TensorCore -> never request all of it (headroom for Mosaic scratch).
        cap = 52 * _MIB
        tm_cap = 512
    return cap, int(cap * 0.85), tm_cap


def _th_candidates(H):
    # Prefer multiples of 256 (v6e/v7x MXU is 256-wide in N); 128 only as fallback.
    cands = [t for t in range(min(2048, H), 255, -256) if H % t == 0]
    if not cands and H % 128 == 0:
        cands.append(128)
    if not cands:
        cands.append(H)
    return cands


def _vmem_estimate(tm, th, D, wbytes, out_bytes, use_scratch):
    est = 2 * tm * D * wbytes               # x row-tile (double-buffered)
    est += 2 * D * (2 * th) * wbytes        # fused w1|w3 slice (double-buffered)
    est += 2 * th * D * wbytes              # w2 slice (double-buffered)
    est += 2 * (2 * th + D) * 4             # bias slices (double-buffered)
    est += 2 * tm * D * out_bytes           # output row-tile (double-buffered)
    if use_scratch:
        est += tm * D * 4                   # f32 accumulator scratch
    est += 3 * tm * th * 4                  # h13 / gated f32 temporaries
    return est


def _pick_tiles(N, D, H, fit_budget, wbytes, out_bytes, use_scratch, tm_cap):
    th_cands = _th_candidates(H)
    cap = max(16, tm_cap)
    while True:
        # Balanced row tiles: avoid a near-empty padded tail tile that would
        # re-stream all weights for garbage rows.
        n_tiles = _cdiv(N, cap)
        tm = _round_up(_cdiv(N, n_tiles), 16)
        for th in th_cands:
            if _vmem_estimate(tm, th, D, wbytes, out_bytes, use_scratch) <= fit_budget:
                return tm, th
        if cap <= 16:
            return tm, th_cands[-1]
        cap = max(16, cap // 2)


# ---------------------------------------------------------------------------
# Wrapper
# ---------------------------------------------------------------------------
def feed_forward(x, w1, b1, w3, b3, w2, b2, *, tm=None, th=None,
                 compute_dtype=jnp.bfloat16, out_dtype=None):
    """Fused SwiGLU FFN.

    x: (..., D) activations; weights stored (in_features, out_features).
    Returns same leading shape, feature dim D, dtype `out_dtype` (default x.dtype).
    """
    orig_shape = x.shape
    D = orig_shape[-1]
    x2 = x.reshape(-1, D)
    N = x2.shape[0]
    H = w1.shape[1]
    if out_dtype is None:
        out_dtype = x.dtype

    use_scratch = jnp.dtype(out_dtype) != jnp.dtype(jnp.float32)
    wbytes = jnp.dtype(compute_dtype).itemsize
    out_bytes = jnp.dtype(out_dtype).itemsize

    vmem_cap, fit_budget, tm_cap = _hw_params()
    auto_tm, auto_th = _pick_tiles(N, D, H, fit_budget, wbytes, out_bytes,
                                   use_scratch, tm_cap)
    if tm is None:
        tm = auto_tm
    if th is None:
        th = auto_th
    assert H % th == 0, "hidden dim must be divisible by the hidden tile"

    # Pad ragged token counts to a tile multiple; extra rows are zeros, sliced off below.
    n_pad = _round_up(N, tm)
    if n_pad != N:
        x2 = jnp.pad(x2, ((0, n_pad - N), (0, 0)))

    # bf16 MXU operands on all generations (v5e bf16 MXU runs at full rate);
    # biases and gate math stay f32 (matches v5e's f32-only VPU/EUP too).
    xc = x2.astype(compute_dtype)
    nk = H // th
    # Fuse w1|w3 per hidden tile into one (D, 2*th) slab -> one weight stream,
    # one wide gate+up matmul.  (One-time layout prep; constant-folds under jit.)
    w13 = jnp.concatenate(
        [w1.astype(compute_dtype).reshape(D, nk, th),
         w3.astype(compute_dtype).reshape(D, nk, th)], axis=2).reshape(D, 2 * H)
    b13 = jnp.concatenate(
        [b1.astype(jnp.float32).reshape(nk, th),
         b3.astype(jnp.float32).reshape(nk, th)], axis=1).reshape(1, 2 * H)
    w2c = w2.astype(compute_dtype)
    b2r = b2.reshape(1, D).astype(jnp.float32)

    grid = (n_pad // tm, nk)

    # Weights / biases are re-streamed once per row tile -> multiply by grid[0].
    cost = pl.CostEstimate(
        flops=2 * n_pad * D * H * 3,
        transcendentals=n_pad * H,
        bytes_accessed=(grid[0] * 3 * D * H * wbytes
                        + n_pad * D * (wbytes + out_bytes)
                        + grid[0] * (2 * H + D) * 4),
    )

    est = _vmem_estimate(tm, th, D, wbytes, out_bytes, use_scratch)
    vmem_limit = int(min(vmem_cap, max(32 * _MIB, est + est // 4)))

    in_specs = [
        pl.BlockSpec((tm, D), lambda i, k: (i, 0)),        # x row-tile (resident over k)
        pl.BlockSpec((D, 2 * th), lambda i, k: (0, k)),    # fused w1|w3 slice
        pl.BlockSpec((1, 2 * th), lambda i, k: (0, k)),    # fused b1|b3 slice
        pl.BlockSpec((th, D), lambda i, k: (k, 0)),        # w2 slice
        pl.BlockSpec((1, D), lambda i, k: (0, 0)),         # b2
    ]
    out_spec = pl.BlockSpec((tm, D), lambda i, k: (i, 0))

    kernel = _ffn_kernel_scratch if use_scratch else _ffn_kernel_acc_out
    scratch = [pltpu.VMEM((tm, D), jnp.float32)] if use_scratch else []

    out = pl.pallas_call(
        kernel,
        out_shape=jax.ShapeDtypeStruct((n_pad, D), out_dtype),
        grid_spec=pltpu.PrefetchScalarGridSpec(
            num_scalar_prefetch=0,
            grid=grid,
            in_specs=in_specs,
            out_specs=out_spec,
            scratch_shapes=scratch,
        ),
        compiler_params=pltpu.CompilerParams(
            dimension_semantics=("parallel", "arbitrary"),
            vmem_limit_bytes=vmem_limit,
        ),
        cost_estimate=cost,
    )(xc, w13, b13, w2c, b2r)

    # TODO(synk): on v7x decode (grid[0] == 1) one TensorCore idles; sharding the hidden
    # (k) axis across the two cores with a partial-sum combine would ~2x that regime.
    # TODO(synk): fp8 (v7x) / int8 (v5e/v6e) weight quantization would halve weight HBM
    # bytes for decode; omitted here to keep exact module numerics.
    return out[:N].reshape(orig_shape[:-1] + (D,))


# ---------------------------------------------------------------------------
# Module-consistent init + reference
# ---------------------------------------------------------------------------
def _compute_hidden_dim(hidden_dim, multiple_of, ffn_dim_multiplier):
    # Matches FeedForward.__init__
    hidden_dim = int(2 * hidden_dim / 3)
    if ffn_dim_multiplier is not None:
        hidden_dim = int(ffn_dim_multiplier * hidden_dim)
    hidden_dim = multiple_of * ((hidden_dim + multiple_of - 1) // multiple_of)
    return hidden_dim


def _kaiming_uniform(key, fan_in, fan_out):
    # kaiming_uniform_(a=sqrt(5)) on a (fan_out, fan_in) torch weight -> bound = 1/sqrt(fan_in).
    bound = 1.0 / math.sqrt(fan_in)
    # stored transposed: (fan_in, fan_out) so the kernel does x @ W
    return jax.random.uniform(key, (fan_in, fan_out), jnp.float32, -bound, bound)


def _bias_init(key, fan_in, fan_out):
    bound = 1.0 / math.sqrt(fan_in)
    return jax.random.uniform(key, (fan_out,), jnp.float32, -bound, bound)


def reference_ffn(x, w1, b1, w3, b3, w2, b2, compute_dtype=jnp.bfloat16):
    # Same numerics as the kernel: bf16 matmul operands, f32 accum, f32 gate math.
    xc = x.astype(compute_dtype)
    h1 = jnp.dot(xc, w1.astype(compute_dtype),
                 preferred_element_type=jnp.float32) + b1
    h3 = jnp.dot(xc, w3.astype(compute_dtype),
                 preferred_element_type=jnp.float32) + b3
    g = (h1 * jax.nn.sigmoid(h1)) * h3
    return jnp.dot(g.astype(compute_dtype), w2.astype(compute_dtype),
                   preferred_element_type=jnp.float32) + b2


# ---------------------------------------------------------------------------
# Test driver
# ---------------------------------------------------------------------------
if __name__ == "__main__":
    # Small, module-consistent shapes.
    batch, seq, dim = 2, 8, 128
    multiple_of = 256
    ffn_dim_multiplier = None
    hidden_in = 4 * dim                                                       # usual hidden_dim arg
    hidden = _compute_hidden_dim(hidden_in, multiple_of, ffn_dim_multiplier)  # -> 512

    key = jax.random.PRNGKey(0)
    kx, k1, kb1, k3, kb3, k2, kb2 = jax.random.split(key, 7)

    x = jax.random.normal(kx, (batch, seq, dim), jnp.float32)

    # lora_rank = -1 -> plain linear layers with bias (bias_tuning=True)
    w1 = _kaiming_uniform(k1, dim, hidden)
    b1 = _bias_init(kb1, dim, hidden)
    w3 = _kaiming_uniform(k3, dim, hidden)
    b3 = _bias_init(kb3, dim, hidden)
    w2 = _kaiming_uniform(k2, hidden, dim)
    b2 = _bias_init(kb2, hidden, dim)

    # --- main case: (B, S, D) handled directly by the wrapper -------------------
    out = feed_forward(x, w1, b1, w3, b3, w2, b2)
    jax.block_until_ready(out)
    ref = reference_ffn(x.reshape(batch * seq, dim),
                        w1, b1, w3, b3, w2, b2).reshape(batch, seq, dim)
    assert out.shape == (batch, seq, dim)
    assert jnp.allclose(out, ref, atol=1e-2, rtol=1e-2), "mismatch vs reference"

    # --- ragged token count exercises the balanced-tile / padded-tail path ------
    n_ragged = 20
    x_ragged = jax.random.normal(kx, (n_ragged, dim), jnp.float32)
    out_ragged = feed_forward(x_ragged, w1, b1, w3, b3, w2, b2)
    jax.block_until_ready(out_ragged)
    ref_ragged = reference_ffn(x_ragged, w1, b1, w3, b3, w2, b2)
    assert out_ragged.shape == (n_ragged, dim)
    assert jnp.allclose(out_ragged, ref_ragged, atol=1e-2, rtol=1e-2), "ragged mismatch"

    # --- bf16-output path (scratch-accumulator variant) -------------------------
    out_bf16 = feed_forward(x, w1, b1, w3, b3, w2, b2, out_dtype=jnp.bfloat16)
    jax.block_until_ready(out_bf16)
    assert jnp.allclose(out_bf16.astype(jnp.float32), ref, atol=5e-2, rtol=5e-2), \
        "bf16-output mismatch"

    print("KERNEL_OK")
</pallas_src>

<mosaic_0001>
module attributes {stable_mosaic.version = 11 : i64} {
  func.func @_ffn_kernel_acc_out(%arg0: i32, %arg1: i32, %arg2: memref<16x128xbf16, #tpu.memory_space<vmem>>, %arg3: memref<128x1024xbf16, #tpu.memory_space<vmem>>, %arg4: memref<1x1024xf32, #tpu.memory_space<vmem>>, %arg5: memref<512x128xbf16, #tpu.memory_space<vmem>>, %arg6: memref<1x128xf32, #tpu.memory_space<vmem>>, %arg7: memref<16x128xf32, #tpu.memory_space<vmem>>) attributes {dimension_semantics = [#tpu.dimension_semantics<parallel>, #tpu.dimension_semantics<arbitrary>], iteration_bounds = array<i64: 1, 1>, scalar_prefetch = 0 : i64, scratch_operands = 0 : i64, tpu.core_type = #tpu.core_type<tc>, window_params = [{transform_indices = @transform_0, window_bounds = array<i64: 16, 128>}, {transform_indices = @transform_1, window_bounds = array<i64: 128, 1024>}, {transform_indices = @transform_2, window_bounds = array<i64: 1, 1024>}, {transform_indices = @transform_3, window_bounds = array<i64: 512, 128>}, {pipeline_mode = #tpu.pipeline_mode<synchronous>, transform_indices = @transform_4, window_bounds = array<i64: 1, 128>}, {transform_indices = @transform_5, window_bounds = array<i64: 16, 128>}]} {
    %c0_i32 = arith.constant 0 : i32
    %0 = arith.cmpi eq, %arg1, %c0_i32 : i32
    %1 = arith.extui %0 : i1 to i32
    %c0_i32_0 = arith.constant 0 : i32
    %2 = arith.cmpi ne, %1, %c0_i32_0 : i32
    scf.if %2 {
      %cst_16 = arith.constant 0.000000e+00 : f32
      %27 = vector.broadcast %cst_16 : f32 to vector<16x128xf32>
      %c0_17 = arith.constant 0 : index
      %c0_18 = arith.constant 0 : index
      %28 = vector.load %arg7[%c0_17, %c0_18] : memref<16x128xf32, #tpu.memory_space<vmem>>, vector<16x128xf32>
      tpu.vector_store %arg7[%c0_17, %c0_18], %27 {strides = array<i32>} : memref<16x128xf32, #tpu.memory_space<vmem>>, vector<16x128xf32>,
    } else {
    }
    %c0 = arith.constant 0 : index
    %c0_1 = arith.constant 0 : index
    %3 = vector.load %arg2[%c0, %c0_1] : memref<16x128xbf16, #tpu.memory_space<vmem>>, vector<16x128xbf16>
    %c0_2 = arith.constant 0 : index
    %c0_3 = arith.constant 0 : index
    %4 = vector.load %arg3[%c0_2, %c0_3] : memref<128x1024xbf16, #tpu.memory_space<vmem>>, vector<128x1024xbf16>
    %cst = arith.constant dense<0.000000e+00> : vector<16x1024xf32>
    %5 = tpu.matmul %3, %4, %cst {dimension_numbers = #tpu.dot_dimension_numbers<[1], [0], [0], [1], [0, 0, 1, 1], [], []>} : vector<16x128xbf16>, vector<128x1024xbf16>, vector<16x1024xf32> -> vector<16x1024xf32>
    %c0_4 = arith.constant 0 : index
    %c0_5 = arith.constant 0 : index
    %6 = vector.load %arg4[%c0_4, %c0_5] : memref<1x1024xf32, #tpu.memory_space<vmem>>, vector<1x1024xf32>
    %7 = vector.broadcast %6 : vector<1x1024xf32> to vector<16x1024xf32>
    %8 = arith.addf %5, %7 : vector<16x1024xf32>
    %9 = vector.extract_strided_slice %8 {offsets = [0, 0], sizes = [16, 512], strides = [1, 1]} : vector<16x1024xf32> to vector<16x512xf32>
    %10 = vector.extract_strided_slice %8 {offsets = [0, 512], sizes = [16, 512], strides = [1, 1]} : vector<16x1024xf32> to vector<16x512xf32>
    %11 = arith.negf %9 : vector<16x512xf32>
    %12 = math.exp %11 : vector<16x512xf32>
    %cst_6 = arith.constant 1.000000e+00 : f32
    %13 = vector.broadcast %cst_6 : f32 to vector<16x512xf32>
    %14 = arith.addf %13, %12 : vector<16x512xf32>
    %15 = arith.divf %13, %14 : vector<16x512xf32>
    %16 = arith.mulf %9, %15 : vector<16x512xf32>
    %17 = arith.mulf %16, %10 : vector<16x512xf32>
    %c0_7 = arith.constant 0 : index
    %c0_8 = arith.constant 0 : index
    %18 = vector.load %arg7[%c0_7, %c0_8] : memref<16x128xf32, #tpu.memory_space<vmem>>, vector<16x128xf32>
    %19 = arith.truncf %17 : vector<16x512xf32> to vector<16x512xbf16>
    %c0_9 = arith.constant 0 : index
    %c0_10 = arith.constant 0 : index
    %20 = vector.load %arg5[%c0_9, %c0_10] : memref<512x128xbf16, #tpu.memory_space<vmem>>, vector<512x128xbf16>
    %cst_11 = arith.constant dense<0.000000e+00> : vector<16x128xf32>
    %21 = tpu.matmul %19, %20, %cst_11 {dimension_numbers = #tpu.dot_dimension_numbers<[1], [0], [0], [1], [0, 0, 1, 1], [], []>} : vector<16x512xbf16>, vector<512x128xbf16>, vector<16x128xf32> -> vector<16x128xf32>
    %22 = arith.addf %18, %21 : vector<16x128xf32>
    %c0_12 = arith.constant 0 : index
    %c0_13 = arith.constant 0 : index
    %23 = vector.load %arg7[%c0_12, %c0_13] : memref<16x128xf32, #tpu.memory_space<vmem>>, vector<16x128xf32>
    tpu.vector_store %arg7[%c0_12, %c0_13], %22 {strides = array<i32>} : memref<16x128xf32, #tpu.memory_space<vmem>>, vector<16x128xf32>,
    %c0_i32_14 = arith.constant 0 : i32
    %24 = arith.cmpi eq, %arg1, %c0_i32_14 : i32
    %25 = arith.extui %24 : i1 to i32
    %c0_i32_15 = arith.constant 0 : i32
    %26 = arith.cmpi ne, %25, %c0_i32_15 : i32
    scf.if %26 {
      %c0_16 = arith.constant 0 : index
      %c0_17 = arith.constant 0 : index
      %27 = vector.load %arg7[%c0_16, %c0_17] : memref<16x128xf32, #tpu.memory_space<vmem>>, vector<16x128xf32>
      %c0_18 = arith.constant 0 : index
      %c0_19 = arith.constant 0 : index
      %28 = vector.load %arg6[%c0_18, %c0_19] : memref<1x128xf32, #tpu.memory_space<vmem>>, vector<1x128xf32>
      %29 = vector.broadcast %28 : vector<1x128xf32> to vector<16x128xf32>
      %30 = arith.addf %27, %29 : vector<16x128xf32>
      %c0_20 = arith.constant 0 : index
      %c0_21 = arith.constant 0 : index
      %31 = vector.load %arg7[%c0_20, %c0_21] : memref<16x128xf32, #tpu.memory_space<vmem>>, vector<16x128xf32>
      tpu.vector_store %arg7[%c0_20, %c0_21], %30 {strides = array<i32>} : memref<16x128xf32, #tpu.memory_space<vmem>>, vector<16x128xf32>,
    } else {
    }
    return
  }
  func.func @transform_0(%arg0: i32, %arg1: i32) -> (i32, i32) {
    %c0_i32 = arith.constant 0 : i32
    %c0_i32_0 = arith.constant 0 : i32
    return %arg0, %c0_i32 : i32, i32
  }
  func.func @transform_1(%arg0: i32, %arg1: i32) -> (i32, i32) {
    %c0_i32 = arith.constant 0 : i32
    %c0_i32_0 = arith.constant 0 : i32
    return %c0_i32, %arg1 : i32, i32
  }
  func.func @transform_2(%arg0: i32, %arg1: i32) -> (i32, i32) {
    %c0_i32 = arith.constant 0 : i32
    %c0_i32_0 = arith.constant 0 : i32
    return %c0_i32, %arg1 : i32, i32
  }
  func.func @transform_3(%arg0: i32, %arg1: i32) -> (i32, i32) {
    %c0_i32 = arith.constant 0 : i32
    %c0_i32_0 = arith.constant 0 : i32
    return %arg1, %c0_i32 : i32, i32
  }
  func.func @transform_4(%arg0: i32, %arg1: i32) -> (i32, i32) {
    %c0_i32 = arith.constant 0 : i32
    %c0_i32_0 = arith.constant 0 : i32
    %c0_i32_1 = arith.constant 0 : i32
    return %c0_i32, %c0_i32_0 : i32, i32
  }
  func.func @transform_5(%arg0: i32, %arg1: i32) -> (i32, i32) {
    %c0_i32 = arith.constant 0 : i32
    %c0_i32_0 = arith.constant 0 : i32
    return %arg0, %c0_i32 : i32, i32
  }
}

</mosaic_0001>

<bundles_post_ra>
// kernel: tpu_custom_call.1
= control target key start
LH: loop header
LB: loop body
LE: loop exit
PB: predicated region body
PF: predicated region fallthrough
CT: control target
= control target key end

     0   :  { %10 = vsyncpa [#allocation3], 0  ;;  %s2101_s0 = inlined_call_operand.hbm [shape: bf16[16,128], index: 0, kind: input, shape index: {}]   ;;  %s2102_s1 = inlined_call_operand.hbm [shape: bf16[128,1024], index: 1, kind: input, shape index: {}]   ;;  %s2103_s2 = inlined_call_operand.hbm [shape: f32[1,1024], index: 2, kind: input, shape index: {}]   ;;  %s2104_s3 = inlined_call_operand.hbm [shape: bf16[512,128], index: 3, kind: input, shape index: {}]   ;;  %s2105_s4 = inlined_call_operand.vmem [shape: f32[1,128], index: 4, kind: input, shape index: {}]   ;;  %s2106_s5 = inlined_call_operand.hbm [shape: f32[16,128], index: 5, kind: output, shape index: {}]  }
   0x1   :  { %11 = vsyncpa [#allocation6], 0 }
   0x2   :  { %12 = vsyncpa [#allocation9], 0  ;;  %s31_s20 = sshll.u32 %s2102_s1, 4  ;;  %s32_s20 = int_to_ptr.hbm [resolvable:$true] %s31_s20 }
   0x3   :  { %13 = vsyncpa [#allocation4], 0  ;;  %s1800_s21 = smov [#allocation5]   ;;  %s18_s25 = sshll.u32 %s2101_s0, 4  ;;  %s19_s25 = int_to_ptr.hbm [resolvable:$true] %s18_s25 }
   0x4   :  { %s33_s22 = sshll.u32 %s1800_s21, 4  ;;  %s1801_s26 = smov 512   ;;  %s34_s22 = int_to_ptr.vmem [resolvable:$true] %s33_s22 }
   0x5   :  { %s1802_s27 = smov 32   ;;  %s1803_s28 = smov [#allocation2]  }
   0x6   :  { %39 = dma.hbm_to_vmem [thread:$0]  %s32_s20, 8192, %s34_s22, [#allocation6], %s1801_s26, %s1801_s26, %s1802_s27  }
   0x7   :  { %s20_s29 = sshll.u32 %s1803_s28, 4  ;;  %s1804_s30 = smov 64   ;;  %s21_s29 = int_to_ptr.vmem [resolvable:$true] %s20_s29 }
   0x8   :  { %s1805_s6 = smov 4   ;;  %s45_s8 = sshll.u32 %s2103_s2, 4  ;;  %s46_s8 = int_to_ptr.hbm [resolvable:$true] %s45_s8 }
   0x9   :  { %26 = dma.hbm_to_vmem [thread:$0]  %s19_s25, 128, %s21_s29, [#allocation3], %s1804_s30, %s1804_s30, %s1805_s6  }
   0xa   :  { %s1806_s9 = smov [#allocation7]   ;;  %s55_s12 = sshll.u32 %s2104_s3, 4  ;;  %s56_s12 = int_to_ptr.hbm [resolvable:$true] %s55_s12 }
   0xb   :  { %s47_s10 = sshll.u32 %s1806_s9, 4  ;;  %s1807_s13 = smov [#allocation8]   ;;  %s48_s10 = int_to_ptr.vmem [resolvable:$true] %s47_s10 }
   0xc   :  { %50 = dma.hbm_to_vmem [thread:$0]  %s46_s8, 128, %s48_s10, [#allocation6]  }
   0xd   :  { %s57_s14 = sshll.u32 %s1807_s13, 4  ;;  %s58_s14 = int_to_ptr.vmem [resolvable:$true] %s57_s14 }
   0xe   :  { %63 = dma.hbm_to_vmem [thread:$0]  %s56_s12, 4096, %s58_s14, [#allocation9], %s1804_s30, %s1804_s30, %s1805_s6  }
   0xf   :  { %1792 = dma.done.wait [#allocation3], 128  }
  0x10   :  { %1793 = vsyncadd [#allocation3], 4294967168 }
  0x11   :  { %1794 = dma.done.wait [#allocation6], 8320  }
  0x12   :  { %1795 = vsyncadd [#allocation6], 4294958976 }
  0x13   :  { %1796 = dma.done.wait [#allocation9], 4096  }
  0x14   :  { %1797 = vsyncadd [#allocation9], 4294963200  ;;  %v1364_v0 = vld [vmem:[#allocation5 + $0x1c0] sm:$0xf]  ;;  %v1587_v2 = vld [vmem:[#allocation5 + $0x1c4] sm:$0xf] }
  0x15   :  { %v1591_v1 = vld [vmem:[#allocation5 + $0x1dc] sm:$0xf0]  ;;  %v1366_v4 = vld [vmem:[#allocation5 + $0x1e0] sm:$0xf0]  ;;  %v1372_v5 = vld [vmem:[#allocation5 + $0x1c8] sm:$0xf] }
  0x16   :  { %v1365_v3 = vor.u32 %v1591_v1, %v1364_v0  ;;  %v1592_v6 = vld [vmem:[#allocation5 + $0x1e4] sm:$0xf0]  ;;  %v1369_v7 = vor.u32 %v1587_v2, %v1366_v4  ;;  %v1588_v9 = vld [vmem:[#allocation5 + $0x1cc] sm:$0xf]  ;;  %v1332_v11 = vld [vmem:[#allocation5 + $0x180] sm:$0xf] }
  0x17   :  { %v1373_v8 = vor.u32 %v1592_v6, %v1372_v5  ;;  %v1374_v10 = vld [vmem:[#allocation5 + $0x1e8] sm:$0xf0]  ;;  %v1583_v13 = vld [vmem:[#allocation5 + $0x19c] sm:$0xf0]  ;;  %v1579_v14 = vld [vmem:[#allocation5 + $0x184] sm:$0xf] }
  0x18   :  { %498 = vmatpush.bf16.msra.mxu0 %v1365_v3  ;;  %v1377_v12 = vor.u32 %v1588_v9, %v1374_v10  ;;  %v1334_v15 = vld [vmem:[#allocation5 + $0x1a0] sm:$0xf0]  ;;  %512 = vmatpush.bf16.msra.mxu1 %v1369_v7  ;;  %v1333_v16 = vor.u32 %v1583_v13, %v1332_v11  ;;  %v1340_v18 = vld [vmem:[#allocation5 + $0x188] sm:$0xf]  ;;  %v1580_v20 = vld [vmem:[#allocation5 + $0x18c] sm:$0xf] }
  0x19   :  { %526 = vmatpush.bf16.msra.mxu2 %v1373_v8  ;;  %v1337_v17 = vor.u32 %v1579_v14, %v1334_v15  ;;  %v1584_v19 = vld [vmem:[#allocation5 + $0x1a4] sm:$0xf0]  ;;  %v1342_v22 = vld [vmem:[#allocation5 + $0x1a8] sm:$0xf0]  ;;  %v1300_v23 = vld [vmem:[#allocation5 + $0x140] sm:$0xf] }
  0x1a   :  { %540 = vmatpush.bf16.msra.mxu3 %v1377_v12  ;;  %v1341_v21 = vor.u32 %v1584_v19, %v1340_v18  ;;  %v1575_v24 = vld [vmem:[#allocation5 + $0x15c] sm:$0xf0]  ;;  %v1345_v25 = vor.u32 %v1580_v20, %v1342_v22  ;;  %v1571_v26 = vld [vmem:[#allocation5 + $0x144] sm:$0xf]  ;;  %v1308_v28 = vld [vmem:[#allocation5 + $0x148] sm:$0xf] }
  0x1b   :  { %v1302_v27 = vld [vmem:[#allocation5 + $0x160] sm:$0xf0]  ;;  %v1301_v29 = vor.u32 %v1575_v24, %v1300_v23  ;;  %v1576_v30 = vld [vmem:[#allocation5 + $0x164] sm:$0xf0]  ;;  %v1572_v31 = vld [vmem:[#allocation5 + $0x14c] sm:$0xf] }
  0x1c   :  { %499 = vmatpush.bf16.msra.mxu0 %v1333_v16  ;;  %v1310_v32 = vld [vmem:[#allocation5 + $0x168] sm:$0xf0]  ;;  %513 = vmatpush.bf16.msra.mxu1 %v1337_v17  ;;  %v1305_v33 = vor.u32 %v1571_v26, %v1302_v27  ;;  %v1309_v34 = vor.u32 %v1576_v30, %v1308_v28  ;;  %v1268_v35 = vld [vmem:[#allocation5 + $0x100] sm:$0xf]  ;;  %v1563_v37 = vld [vmem:[#allocation5 + $0x104] sm:$0xf] }
  0x1d   :  { %527 = vmatpush.bf16.msra.mxu2 %v1341_v21  ;;  %v1567_v36 = vld [vmem:[#allocation5 + $0x11c] sm:$0xf0]  ;;  %v1313_v38 = vor.u32 %v1572_v31, %v1310_v32  ;;  %v1270_v39 = vld [vmem:[#allocation5 + $0x120] sm:$0xf0]  ;;  %v1276_v40 = vld [vmem:[#allocation5 + $0x108] sm:$0xf] }
  0x1e   :  { %541 = vmatpush.bf16.msra.mxu3 %v1345_v25  ;;  %v1568_v41 = vld [vmem:[#allocation5 + $0x124] sm:$0xf0]  ;;  %v1564_v42 = vld [vmem:[#allocation5 + $0x10c] sm:$0xf]  ;;  %v1269_v44 = vor.u32 %v1567_v36, %v1268_v35  ;;  %v1273_v45 = vor.u32 %v1563_v37, %v1270_v39  ;;  %v1236_v47 = vld [vmem:[#allocation5 + $0xc0] sm:$0xf] }
  0x1f   :  { %v1278_v43 = vld [vmem:[#allocation5 + $0x128] sm:$0xf0]  ;;  %v1277_v46 = vor.u32 %v1568_v41, %v1276_v40  ;;  %v1559_v48 = vld [vmem:[#allocation5 + $0xdc] sm:$0xf0]  ;;  %v1555_v49 = vld [vmem:[#allocation5 + $0xc4] sm:$0xf] }
  0x20   :  { %500 = vmatpush.bf16.msra.mxu0 %v1301_v29  ;;  %514 = vmatpush.bf16.msra.mxu1 %v1305_v33  ;;  %v1281_v50 = vor.u32 %v1564_v42, %v1278_v43  ;;  %v1238_v51 = vld [vmem:[#allocation5 + $0xe0] sm:$0xf0]  ;;  %v1244_v52 = vld [vmem:[#allocation5 + $0xc8] sm:$0xf]  ;;  %v1556_v54 = vld [vmem:[#allocation5 + $0xcc] sm:$0xf]  ;;  %v1237_v56 = vor.u32 %v1559_v48, %v1236_v47 }
  0x21   :  { %528 = vmatpush.bf16.msra.mxu2 %v1309_v34  ;;  %v1560_v53 = vld [vmem:[#allocation5 + $0xe4] sm:$0xf0]  ;;  %v1246_v55 = vld [vmem:[#allocation5 + $0xe8] sm:$0xf0]  ;;  %v1241_v57 = vor.u32 %v1555_v49, %v1238_v51  ;;  %v1204_v59 = vld [vmem:[#allocation5 + $0x80] sm:$0xf] }
  0x22   :  { %542 = vmatpush.bf16.msra.mxu3 %v1313_v38  ;;  %v1245_v58 = vor.u32 %v1560_v53, %v1244_v52  ;;  %v1551_v60 = vld [vmem:[#allocation5 + $0x9c] sm:$0xf0]  ;;  %v1547_v61 = vld [vmem:[#allocation5 + $0x84] sm:$0xf]  ;;  %v1249_v62 = vor.u32 %v1556_v54, %v1246_v55  ;;  %v1212_v0 = vld [vmem:[#allocation5 + $0x88] sm:$0xf] }
  0x23   :  { %v1206_v63 = vld [vmem:[#allocation5 + $0xa0] sm:$0xf0]  ;;  %v1552_v1 = vld [vmem:[#allocation5 + $0xa4] sm:$0xf0]  ;;  %v1548_v2 = vld [vmem:[#allocation5 + $0x8c] sm:$0xf]  ;;  %v1205_v4 = vor.u32 %v1551_v60, %v1204_v59 }
  0x24   :  { %501 = vmatpush.bf16.msra.mxu0 %v1269_v44  ;;  %515 = vmatpush.bf16.msra.mxu1 %v1273_v45  ;;  %v1214_v3 = vld [vmem:[#allocation5 + $0xa8] sm:$0xf0]  ;;  %v1209_v5 = vor.u32 %v1547_v61, %v1206_v63  ;;  %v1213_v6 = vor.u32 %v1552_v1, %v1212_v0  ;;  %v1172_v7 = vld [vmem:[#allocation5 + $0x40] sm:$0xf]  ;;  %v1539_v9 = vld [vmem:[#allocation5 + $0x44] sm:$0xf] }
  0x25   :  { %529 = vmatpush.bf16.msra.mxu2 %v1277_v46  ;;  %v1543_v8 = vld [vmem:[#allocation5 + $0x5c] sm:$0xf0]  ;;  %v1217_v10 = vor.u32 %v1548_v2, %v1214_v3  ;;  %v1174_v11 = vld [vmem:[#allocation5 + $0x60] sm:$0xf0]  ;;  %v1180_v12 = vld [vmem:[#allocation5 + $0x48] sm:$0xf] }
  0x26   :  { %543 = vmatpush.bf16.msra.mxu3 %v1281_v50  ;;  %v1544_v13 = vld [vmem:[#allocation5 + $0x64] sm:$0xf0]  ;;  %v1540_v14 = vld [vmem:[#allocation5 + $0x4c] sm:$0xf]  ;;  %v1173_v16 = vor.u32 %v1543_v8, %v1172_v7  ;;  %v1140_v17 = vld [vmem:[#allocation5] sm:$0xf]  ;;  %v1177_v19 = vor.u32 %v1539_v9, %v1174_v11 }
  0x27   :  { %v1182_v15 = vld [vmem:[#allocation5 + $0x68] sm:$0xf0]  ;;  %v1535_v18 = vld [vmem:[#allocation5 + $0x1c] sm:$0xf0]  ;;  %v1181_v20 = vor.u32 %v1544_v13, %v1180_v12  ;;  %v1531_v21 = vld [vmem:[#allocation5 + $0x4] sm:$0xf] }
  0x28   :  { %502 = vmatpush.bf16.msra.mxu0 %v1237_v56  ;;  %516 = vmatpush.bf16.msra.mxu1 %v1241_v57  ;;  %v1142_v22 = vld [vmem:[#allocation5 + $0x20] sm:$0xf0]  ;;  %v1148_v23 = vld [vmem:[#allocation5 + $0x8] sm:$0xf]  ;;  %v1185_v24 = vor.u32 %v1540_v14, %v1182_v15  ;;  %v1532_v26 = vld [vmem:[#allocation5 + $0xc] sm:$0xf]  ;;  %v1141_v31 = vor.u32 %v1535_v18, %v1140_v17 }
  0x29   :  { %530 = vmatpush.bf16.msra.mxu2 %v1245_v58  ;;  %v1536_v25 = vld [vmem:[#allocation5 + $0x24] sm:$0xf0]  ;;  %v1150_v27 = vld [vmem:[#allocation5 + $0x28] sm:$0xf0]  ;;  %v1388_v28 = vld [vmem:[#allocation5 + $0x1d8] sm:$0xf]  ;;  %v1145_v35 = vor.u32 %v1531_v21, %v1142_v22 }
  0x2a   :  { %544 = vmatpush.bf16.msra.mxu3 %v1249_v62  ;;  %v1594_v29 = vld [vmem:[#allocation5 + $0x1f4] sm:$0xf0]  ;;  %v1590_v30 = vld [vmem:[#allocation5 + $0x1dc] sm:$0xf]  ;;  %v1380_v33 = vld [vmem:[#allocation5 + $0x1d0] sm:$0xf]  ;;  %v1149_v36 = vor.u32 %v1536_v25, %v1148_v23  ;;  %v1153_v39 = vor.u32 %v1532_v26, %v1150_v27 }
  0x2b   :  { %v1390_v32 = vld [vmem:[#allocation5 + $0x1f8] sm:$0xf0]  ;;  %v1593_v34 = vld [vmem:[#allocation5 + $0x1ec] sm:$0xf0]  ;;  %v1589_v37 = vld [vmem:[#allocation5 + $0x1d4] sm:$0xf]  ;;  %v1389_v40 = vor.u32 %v1594_v29, %v1388_v28 }
  0x2c   :  { %503 = vmatpush.bf16.msra.mxu0 %v1205_v4  ;;  %517 = vmatpush.bf16.msra.mxu1 %v1209_v5  ;;  %v1382_v38 = vld [vmem:[#allocation5 + $0x1f0] sm:$0xf0]  ;;  %v1853_v41 = vld [vmem:[#allocation2] sm:$0xff]  ;;  %v1393_v42 = vor.u32 %v1590_v30, %v1390_v32  ;;  %v1381_v43 = vor.u32 %v1593_v34, %v1380_v33  ;;  %v1348_v49 = vld [vmem:[#allocation5 + $0x190] sm:$0xf]  ;;  %s1808_s15 = smov [#allocation10]  }
  0x2d   :  { %531 = vmatpush.bf16.msra.mxu2 %v1213_v6  ;;  %v1356_v44 = vld [vmem:[#allocation5 + $0x198] sm:$0xf]  ;;  %v1582_v46 = vld [vmem:[#allocation5 + $0x19c] sm:$0xf]  ;;  %v1385_v47 = vor.u32 %v1589_v37, %v1382_v38  ;;  %v1585_v50 = vld [vmem:[#allocation5 + $0x1ac] sm:$0xf0] }
  0x2e   :  { %545 = vmatpush.bf16.msra.mxu3 %v1217_v10  ;;  %v1586_v45 = vld [vmem:[#allocation5 + $0x1b4] sm:$0xf0]  ;;  %v1358_v48 = vld [vmem:[#allocation5 + $0x1b8] sm:$0xf0]  ;;  %v1581_v51 = vld [vmem:[#allocation5 + $0x194] sm:$0xf]  ;;  %v1349_v55 = vor.u32 %v1585_v50, %v1348_v49 }
  0x2f   :  { %v1350_v52 = vld [vmem:[#allocation5 + $0x1b0] sm:$0xf0]  ;;  %v1357_v53 = vor.u32 %v1586_v45, %v1356_v44  ;;  %v1361_v54 = vor.u32 %v1582_v46, %v1358_v48  ;;  %v1324_v56 = vld [vmem:[#allocation5 + $0x158] sm:$0xf]  ;;  %v1574_v58 = vld [vmem:[#allocation5 + $0x15c] sm:$0xf] }
  0x30   :  { %504 = vmatpush.bf16.msra.mxu0 %v1173_v16  ;;  %518 = vmatpush.bf16.msra.mxu1 %v1177_v19  ;;  %v1578_v57 = vld [vmem:[#allocation5 + $0x174] sm:$0xf0]  ;;  %v1353_v59 = vor.u32 %v1581_v51, %v1350_v52  ;;  %v1326_v60 = vld [vmem:[#allocation5 + $0x178] sm:$0xf0]  ;;  %v1316_v61 = vld [vmem:[#allocation5 + $0x150] sm:$0xf] }
  0x31   :  { %532 = vmatpush.bf16.msra.mxu2 %v1181_v20  ;;  %v1577_v62 = vld [vmem:[#allocation5 + $0x16c] sm:$0xf0]  ;;  %v1573_v63 = vld [vmem:[#allocation5 + $0x154] sm:$0xf]  ;;  %v1325_v1 = vor.u32 %v1578_v57, %v1324_v56  ;;  %v1329_v2 = vor.u32 %v1574_v58, %v1326_v60  ;;  %v1292_v4 = vld [vmem:[#allocation5 + $0x118] sm:$0xf] }
  0x32   :  { %546 = vmatpush.bf16.msra.mxu3 %v1185_v24  ;;  %v1318_v0 = vld [vmem:[#allocation5 + $0x170] sm:$0xf0]  ;;  %v1317_v3 = vor.u32 %v1577_v62, %v1316_v61  ;;  %v1570_v5 = vld [vmem:[#allocation5 + $0x134] sm:$0xf0]  ;;  %v1566_v6 = vld [vmem:[#allocation5 + $0x11c] sm:$0xf] }
  0x33   :  { %v1321_v7 = vor.u32 %v1573_v63, %v1318_v0  ;;  %v1294_v8 = vld [vmem:[#allocation5 + $0x138] sm:$0xf0]  ;;  %v1284_v9 = vld [vmem:[#allocation5 + $0x110] sm:$0xf]  ;;  %v1565_v11 = vld [vmem:[#allocation5 + $0x114] sm:$0xf]  ;;  %v1293_v13 = vor.u32 %v1570_v5, %v1292_v4 }
  0x34   :  { %505 = vmatpush.bf16.msra.mxu0 %v1141_v31  ;;  %519 = vmatpush.bf16.msra.mxu1 %v1145_v35  ;;  %v1569_v10 = vld [vmem:[#allocation5 + $0x12c] sm:$0xf0]  ;;  %v1286_v12 = vld [vmem:[#allocation5 + $0x130] sm:$0xf0]  ;;  %v1260_v14 = vld [vmem:[#allocation5 + $0xd8] sm:$0xf]  ;;  %v1297_v15 = vor.u32 %v1566_v6, %v1294_v8 }
  0x35   :  { %533 = vmatpush.bf16.msra.mxu2 %v1149_v36  ;;  %v1285_v16 = vor.u32 %v1569_v10, %v1284_v9  ;;  %v1562_v17 = vld [vmem:[#allocation5 + $0xf4] sm:$0xf0]  ;;  %v1558_v18 = vld [vmem:[#allocation5 + $0xdc] sm:$0xf]  ;;  %v1289_v20 = vor.u32 %v1565_v11, %v1286_v12  ;;  %v1252_v21 = vld [vmem:[#allocation5 + $0xd0] sm:$0xf] }
  0x36   :  { %547 = vmatpush.bf16.msra.mxu3 %v1153_v39  ;;  %v1262_v19 = vld [vmem:[#allocation5 + $0xf8] sm:$0xf0]  ;;  %v1561_v22 = vld [vmem:[#allocation5 + $0xec] sm:$0xf0]  ;;  %v1557_v23 = vld [vmem:[#allocation5 + $0xd4] sm:$0xf]  ;;  %v1261_v25 = vor.u32 %v1562_v17, %v1260_v14 }
  0x37   :  { %506 = vmatmul.bf16.vlgmr.msra.gmra.mxu0 %v1853_v41  ;;  %520 = vmatmul.bf16.vlgmr.msra.gmra.mxu1 %v1853_v41  ;;  %v1254_v24 = vld [vmem:[#allocation5 + $0xf0] sm:$0xf0]  ;;  %v1265_v26 = vor.u32 %v1558_v18, %v1262_v19  ;;  %v1253_v27 = vor.u32 %v1561_v22, %v1252_v21  ;;  %v1228_v28 = vld [vmem:[#allocation5 + $0x98] sm:$0xf]  ;;  %v1550_v30 = vld [vmem:[#allocation5 + $0x9c] sm:$0xf] }
  0x38   :  { %554 = vmatpush.bf16.msrb.mxu0 %v1381_v43  ;;  %568 = vmatpush.bf16.msrb.mxu1 %v1385_v47  ;;  %v1554_v29 = vld [vmem:[#allocation5 + $0xb4] sm:$0xf0]  ;;  %v1257_v31 = vor.u32 %v1557_v23, %v1254_v24  ;;  %v1230_v32 = vld [vmem:[#allocation5 + $0xb8] sm:$0xf0]  ;;  %v1220_v33 = vld [vmem:[#allocation5 + $0x90] sm:$0xf] }
  0x39   :  { %582 = vmatpush.bf16.msrb.mxu2 %v1389_v40  ;;  %548 = vmatmul.bf16.vlgmr.msra.gmra.mxu3 %v1853_v41  ;;  %v1553_v34 = vld [vmem:[#allocation5 + $0xac] sm:$0xf0]  ;;  %v1549_v35 = vld [vmem:[#allocation5 + $0x94] sm:$0xf]  ;;  %v1229_v37 = vor.u32 %v1554_v29, %v1228_v28  ;;  %v1233_v38 = vor.u32 %v1550_v30, %v1230_v32  ;;  %v1196_v40 = vld [vmem:[#allocation5 + $0x58] sm:$0xf] }
  0x3a   :  { %596 = vmatpush.bf16.msrb.mxu3 %v1393_v42  ;;  %534 = vmatmul.bf16.vlgmr.msra.gmra.mxu2 %v1853_v41  ;;  %v1222_v36 = vld [vmem:[#allocation5 + $0xb0] sm:$0xf0]  ;;  %v1221_v39 = vor.u32 %v1553_v34, %v1220_v33  ;;  %v1546_v42 = vld [vmem:[#allocation5 + $0x74] sm:$0xf0]  ;;  %v1542_v43 = vld [vmem:[#allocation5 + $0x5c] sm:$0xf] }
  0x3b   :  { %v1225_v44 = vor.u32 %v1549_v35, %v1222_v36  ;;  %v1198_v45 = vld [vmem:[#allocation5 + $0x78] sm:$0xf0]  ;;  %v1188_v46 = vld [vmem:[#allocation5 + $0x50] sm:$0xf]  ;;  %v1541_v48 = vld [vmem:[#allocation5 + $0x54] sm:$0xf]  ;;  %v1197_v50 = vor.u32 %v1546_v42, %v1196_v40 }
  0x3c   :  { %555 = vmatpush.bf16.msrb.mxu0 %v1349_v55  ;;  %569 = vmatpush.bf16.msrb.mxu1 %v1353_v59  ;;  %v1545_v47 = vld [vmem:[#allocation5 + $0x6c] sm:$0xf0]  ;;  %v1190_v49 = vld [vmem:[#allocation5 + $0x70] sm:$0xf0]  ;;  %v1201_v51 = vor.u32 %v1542_v43, %v1198_v45  ;;  %v1534_v55 = vld [vmem:[#allocation5 + $0x1c] sm:$0xf] }
  0x3d   :  { %583 = vmatpush.bf16.msrb.mxu2 %v1357_v53  ;;  %v1189_v52 = vor.u32 %v1545_v47, %v1188_v46  ;;  %v1164_v53 = vld [vmem:[#allocation5 + $0x18] sm:$0xf]  ;;  %v1193_v56 = vor.u32 %v1541_v48, %v1190_v49  ;;  %v1166_v57 = vld [vmem:[#allocation5 + $0x38] sm:$0xf0]  ;;  %v1156_v58 = vld [vmem:[#allocation5 + $0x10] sm:$0xf] }
  0x3e   :  { %597 = vmatpush.bf16.msrb.mxu3 %v1361_v54  ;;  %v1538_v54 = vld [vmem:[#allocation5 + $0x34] sm:$0xf0]  ;;  %v1537_v59 = vld [vmem:[#allocation5 + $0x2c] sm:$0xf0]  ;;  %v1533_v60 = vld [vmem:[#allocation5 + $0x14] sm:$0xf]  ;;  %v1169_v63 = vor.u32 %v1534_v55, %v1166_v57 }
  0x3f   :  { %v1158_v61 = vld [vmem:[#allocation5 + $0x30] sm:$0xf0]  ;;  %v1165_v62 = vor.u32 %v1538_v54, %v1164_v53  ;;  %v1157_v0 = vor.u32 %v1537_v59, %v1156_v58  ;;  %v1863_v4 = vld [vmem:[#allocation7] sm:$0xff]  ;;  %v1601_v6 = vld [vmem:[#allocation8 + $0x30] sm:$0xff]  ;;  %s1117_s16 = sshll.u32 %s1808_s15, 4  ;;  %s1119_s19 = sshll.u32 %s2106_s5, 4  ;;  %s1118_s16 = int_to_ptr.vmem [resolvable:$true] %s1117_s16  ;;  %s1120_s19 = int_to_ptr.hbm [resolvable:$true] %s1119_s19 }
  0x40   :  { %556 = vmatpush.bf16.msrb.mxu0 %v1317_v3  ;;  %570 = vmatpush.bf16.msrb.mxu1 %v1321_v7  ;;  %v1610_v3 = vld [vmem:[#allocation8 + $0x78] sm:$0xff]  ;;  %v156_v5 = vperm.slane %v1863_v4, 0  ;;  %v1609_v7 = vld [vmem:[#allocation8 + $0x70] sm:$0xff]  ;;  %v157_v8 = vperm.slane %v1863_v4, 1  ;;  %v1608_v14 = vld [vmem:[#allocation8 + $0x68] sm:$0xff]  ;;  %v159_v21 = vperm.slane %v1863_v4, 3 }
  0x41   :  { %584 = vmatpush.bf16.msrb.mxu2 %v1325_v1  ;;  %v1161_v1 = vor.u32 %v1533_v60, %v1158_v61  ;;  %v1618_v9 = vld [vmem:[#allocation8 + $0xb8] sm:$0xff]  ;;  %v1617_v17 = vld [vmem:[#allocation8 + $0xb0] sm:$0xff]  ;;  %v1599_v22 = vld [vmem:[#allocation8 + $0x20] sm:$0xff]  ;;  %s1809_s20 = smov 128   ;;  %s1810_s21 = smov 8  }
  0x42   :  { %598 = vmatpush.bf16.msrb.mxu3 %v1329_v2  ;;  %v1602_v2 = vld [vmem:[#allocation8 + $0x38] sm:$0xff]  ;;  %v1625_v18 = vld [vmem:[#allocation8 + $0xf0] sm:$0xff]  ;;  %v1607_v23 = vld [vmem:[#allocation8 + $0x60] sm:$0xff] }
  0x43   :  { %v1626_v10 = vld [vmem:[#allocation8 + $0xf8] sm:$0xff]  ;;  %v1623_v40 = vld [vmem:[#allocation8 + $0xe0] sm:$0xff]  ;;  %v1597_v47 = vld [vmem:[#allocation8 + $0x10] sm:$0xff] }
  0x44   :  { %557 = vmatpush.bf16.msrb.mxu0 %v1285_v16  ;;  %571 = vmatpush.bf16.msrb.mxu1 %v1289_v20  ;;  %v158_v20 = vperm.slane %v1863_v4, 2  ;;  %v1598_v33 = vld [vmem:[#allocation8 + $0x18] sm:$0xff]  ;;  %v1605_v48 = vld [vmem:[#allocation8 + $0x50] sm:$0xff]  ;;  %v1596_v54 = vld [vmem:[#allocation8 + $0x8] sm:$0xff] }
  0x45   :  { %585 = vmatpush.bf16.msrb.mxu2 %v1293_v13  ;;  %v1600_v13 = vld [vmem:[#allocation8 + $0x28] sm:$0xff]  ;;  %v1606_v34 = vld [vmem:[#allocation8 + $0x58] sm:$0xff]  ;;  %v1613_v60 = vld [vmem:[#allocation8 + $0x90] sm:$0xff] }
  0x46   :  { %599 = vmatpush.bf16.msrb.mxu3 %v1297_v15  ;;  %v1604_v55 = vld [vmem:[#allocation8 + $0x48] sm:$0xff]  ;;  %v1621_v61 = vld [vmem:[#allocation8 + $0xd0] sm:$0xff] }
  0x48   :  { %558 = vmatpush.bf16.msrb.mxu0 %v1253_v27  ;;  %572 = vmatpush.bf16.msrb.mxu1 %v1257_v31 }
  0x49   :  { %586 = vmatpush.bf16.msrb.mxu2 %v1261_v25  ;;  %v1616_v25 = vld [vmem:[#allocation8 + $0xa8] sm:$0xff] }
  0x4a   :  { %600 = vmatpush.bf16.msrb.mxu3 %v1265_v26  ;;  %v1624_v26 = vld [vmem:[#allocation8 + $0xe8] sm:$0xff] }
  0x4c   :  { %559 = vmatpush.bf16.msrb.mxu0 %v1221_v39  ;;  %573 = vmatpush.bf16.msrb.mxu1 %v1225_v44  ;;  %v1615_v39 = vld [vmem:[#allocation8 + $0xa0] sm:$0xff] }
  0x4d   :  { %587 = vmatpush.bf16.msrb.mxu2 %v1229_v37 }
  0x4e   :  { %601 = vmatpush.bf16.msrb.mxu3 %v1233_v38 }
  0x50   :  { %560 = vmatpush.bf16.msrb.mxu0 %v1189_v52  ;;  %574 = vmatpush.bf16.msrb.mxu1 %v1193_v56 }
  0x51   :  { %588 = vmatpush.bf16.msrb.mxu2 %v1197_v50  ;;  %v1614_v50 = vld [vmem:[#allocation8 + $0x98] sm:$0xff] }
  0x52   :  { %602 = vmatpush.bf16.msrb.mxu3 %v1201_v51  ;;  %v1622_v51 = vld [vmem:[#allocation8 + $0xd8] sm:$0xff] }
  0x54   :  { %561 = vmatpush.bf16.msrb.mxu0 %v1157_v0  ;;  %575 = vmatpush.bf16.msrb.mxu1 %v1161_v1 }
  0x55   :  { %589 = vmatpush.bf16.msrb.mxu2 %v1165_v62 }
  0x56   :  { %603 = vmatpush.bf16.msrb.mxu3 %v1169_v63 }
  0x57   :  { %562 = vmatmul.bf16.vlgmr.msrb.gmra.mxu0 %v1853_v41  ;;  %576 = vmatmul.bf16.vlgmr.msrb.gmra.mxu1 %v1853_v41 }
  0x58   :  { %590 = vmatmul.bf16.vlgmr.msrb.gmra.mxu2 %v1853_v41  ;;  %1040 = vmatpush.bf16.msra.mxu0 %v1602_v2 }
  0x59   :  { %604 = vmatmul.bf16.vlgmr.msrb.gmra.mxu3 %v1853_v41  ;;  %1054 = vmatpush.bf16.msra.mxu1 %v1610_v3 }
  0x5a   :  { %1068 = vmatpush.bf16.msra.mxu2 %v1618_v9  ;;  %1082 = vmatpush.bf16.msra.mxu3 %v1626_v10 }
  0x5c   :  { %1041 = vmatpush.bf16.msra.mxu0 %v1601_v6  ;;  %v1595_v6 = vld [vmem:[#allocation8] sm:$0xff] }
  0x5d   :  { %1055 = vmatpush.bf16.msra.mxu1 %v1609_v7  ;;  %v1603_v7 = vld [vmem:[#allocation8 + $0x40] sm:$0xff] }
  0x5e   :  { %1069 = vmatpush.bf16.msra.mxu2 %v1617_v17  ;;  %1083 = vmatpush.bf16.msra.mxu3 %v1625_v18  ;;  %v1612_v17 = vld [vmem:[#allocation8 + $0x88] sm:$0xff] }
  0x5f   :  { %v1620_v18 = vld [vmem:[#allocation8 + $0xc8] sm:$0xff] }
  0x60   :  { %1042 = vmatpush.bf16.msra.mxu0 %v1600_v13 }
  0x61   :  { %1056 = vmatpush.bf16.msra.mxu1 %v1608_v14 }
  0x62   :  { %1070 = vmatpush.bf16.msra.mxu2 %v1616_v25  ;;  %1084 = vmatpush.bf16.msra.mxu3 %v1624_v26 }
  0x64   :  { %1043 = vmatpush.bf16.msra.mxu0 %v1599_v22 }
  0x65   :  { %1057 = vmatpush.bf16.msra.mxu1 %v1607_v23 }
  0x66   :  { %1071 = vmatpush.bf16.msra.mxu2 %v1615_v39  ;;  %1085 = vmatpush.bf16.msra.mxu3 %v1623_v40 }
  0x68   :  { %1044 = vmatpush.bf16.msra.mxu0 %v1598_v33 }
  0x69   :  { %1058 = vmatpush.bf16.msra.mxu1 %v1606_v34 }
  0x6a   :  { %1072 = vmatpush.bf16.msra.mxu2 %v1614_v50  ;;  %1086 = vmatpush.bf16.msra.mxu3 %v1622_v51 }
  0x6c   :  { %1045 = vmatpush.bf16.msra.mxu0 %v1597_v47  ;;  %v163_v47 = vperm.slane %v1863_v4, 7 }
  0x6d   :  { %1059 = vmatpush.bf16.msra.mxu1 %v1605_v48 }
  0x6e   :  { %1073 = vmatpush.bf16.msra.mxu2 %v1613_v60  ;;  %1087 = vmatpush.bf16.msra.mxu3 %v1621_v61 }
  0x70   :  { %1046 = vmatpush.bf16.msra.mxu0 %v1596_v54 }
  0x71   :  { %1060 = vmatpush.bf16.msra.mxu1 %v1604_v55 }
  0x72   :  { %1074 = vmatpush.bf16.msra.mxu2 %v1612_v17  ;;  %1088 = vmatpush.bf16.msra.mxu3 %v1620_v18 }
  0x74   :  { %1047 = vmatpush.bf16.msra.mxu0 %v1595_v6 }
  0x75   :  { %1061 = vmatpush.bf16.msra.mxu1 %v1603_v7 }
  0xb4   :  { %v507_v11 = vpop.f32.mrf.mxu0  ;;  %v521_v41 = vpop.f32.mrf.mxu1 }
  0xb5   :  { %v1867_v12 = vadd.f32 %v507_v11, %v156_v5  ;;  %v1869_v15 = vadd.f32 %v521_v41, %v157_v8  ;;  %v160_v41 = vperm.slane %v1863_v4, 4 }
  0xb7   :  { %v1394_v16 = vmul.f32 -1.442695, %v1867_v12  ;;  %v1395_v19 = vmul.f32 -1.442695, %v1869_v15 }
  0xb9   :  { %1640 = vpow2.f32 %v1394_v16  ;;  %v161_v16 = vperm.slane %v1863_v4, 5 }
  0xba   :  { %1642 = vpow2.f32 %v1395_v19 }
  0xbc   :  { %v549_v28 = vpop.f32.mrf.mxu3  ;;  %v509_v29 = vpop.f32.mrf.mxu0 }
  0xbd   :  { %v535_v24 = vpop.f32.mrf.mxu2  ;;  %v1877_v30 = vadd.f32 %v549_v28, %v159_v21  ;;  %v1879_v31 = vadd.f32 %v509_v29, %v156_v5  ;;  %v523_v32 = vpop.f32.mrf.mxu1 }
  0xbe   :  { %v1875_v27 = vadd.f32 %v535_v24, %v158_v20  ;;  %v1882_v36 = vadd.f32 %v523_v32, %v157_v8 }
  0xbf   :  { %v1641_v37 = vpop.eup %1640  ;;  %v1397_v38 = vmul.f32 -1.442695, %v1877_v30  ;;  %v1398_v44 = vmul.f32 -1.442695, %v1879_v31 }
  0xc0   :  { %v1396_v35 = vmul.f32 -1.442695, %v1875_v27  ;;  %v1643_v42 = vpop.eup %1642  ;;  %v1885_v43 = vadd.f32 1.0, %v1641_v37  ;;  %v1399_v46 = vmul.f32 -1.442695, %v1882_v36  ;;  %v1611_v37 = vld [vmem:[#allocation8 + $0x80] sm:$0xff] }
  0xc1   :  { %v1888_v45 = vadd.f32 1.0, %v1643_v42  ;;  %1075 = vmatpush.bf16.msra.mxu2 %v1611_v37 }
  0xc2   :  { %1644 = vpow2.f32 %v1396_v35  ;;  %v651_v3 = vand.u32 2147483647, %v1885_v43  ;;  %v653_v5 = vand.u32 2147483648, %v1885_v43  ;;  %vm647_vm0 = vweird.f32 %v1885_v43 }
  0xc3   :  { %1646 = vpow2.f32 %v1397_v38  ;;  %v666_v10 = vand.u32 2147483647, %v1888_v45  ;;  %vm662_vm1 = vweird.f32 %v1888_v45  ;;  %v1619_v38 = vld [vmem:[#allocation8 + $0xc0] sm:$0xff] }
  0xc4   :  { %1648 = vrcp.f32 %v1885_v43  ;;  %v551_v53 = vpop.f32.mrf.mxu3  ;;  %vm1922_vm2 = vcmp.eq.f32.partialorder %v651_v3, 8.507059e+37  ;;  %v654_v23 = vor.u32 1.1754944e-38, %v653_v5  ;;  %1089 = vmatpush.bf16.msra.mxu3 %v1619_v38 }
  0xc5   :  { %1650 = vrcp.f32 %v1888_v45  ;;  %v537_v49 = vpop.f32.mrf.mxu2  ;;  %v1895_v57 = vadd.f32 %v551_v53, %v159_v21  ;;  %vm1932_vm4 = vcmp.eq.f32.partialorder %v666_v10, 8.507059e+37 }
  0xc6   :  { %1652 = vpow2.f32 %v1398_v44  ;;  %v1893_v52 = vadd.f32 %v537_v49, %v158_v20  ;;  %v668_v20 = vand.u32 2147483648, %v1888_v45 }
  0xc7   :  { %1654 = vpow2.f32 %v1399_v46  ;;  %v1401_v11 = vmul.f32 -1.442695, %v1895_v57  ;;  %v162_v46 = vperm.slane %v1863_v4, 6  ;;  %v1639_v4 = vld [vmem:[%s2105_s4] ss:$0 sm:$0xff] }
  0xc8   :  { %v1645_v56 = vpop.eup %1644  ;;  %v1400_v0 = vmul.f32 -1.442695, %v1893_v52  ;;  %v669_v40 = vor.u32 1.1754944e-38, %v668_v20 }
  0xc9   :  { %v1647_v58 = vpop.eup %1646  ;;  %v1897_v59 = vadd.f32 1.0, %v1645_v56 }
  0xca   :  { %v1899_v62 = vpop.eup %1648  ;;  %v1901_v63 = vadd.f32 1.0, %v1647_v58 }
  0xcb   :  { %v1904_v1 = vpop.eup %1650  ;;  %v643_v2 = vmul.f32 %v1899_v62, %v1885_v43  ;;  %1656 = vrcp.f32 %v1897_v59  ;;  %vm648_vm3 = vweird.f32 %v1899_v62  ;;  %v681_v29 = vand.u32 2147483647, %v1897_v59 }
  0xcc   :  { %v1653_v8 = vpop.eup %1652  ;;  %v658_v9 = vmul.f32 %v1904_v1, %v1888_v45  ;;  %1658 = vrcp.f32 %v1901_v63  ;;  %v683_v34 = vand.u32 2147483648, %v1897_v59  ;;  %v698_v35 = vand.u32 2147483648, %v1901_v63  ;;  %vm1957_vm7 = vmor %vm647_vm0, %vm648_vm3 }
  0xcd   :  { %v1655_v13 = vpop.eup %1654  ;;  %v644_v14 = vsub.f32 1.0, %v643_v2  ;;  %1660 = vpow2.f32 %v1400_v0  ;;  %v1926_v24 = vadd.f32 1.0, %v1653_v8  ;;  %vm663_vm5 = vweird.f32 %v1904_v1 }
  0xce   :  { %v659_v19 = vsub.f32 1.0, %v658_v9  ;;  %v1928_v25 = vadd.f32 1.0, %v1655_v13  ;;  %1662 = vpow2.f32 %v1401_v11  ;;  %vm677_vm6 = vweird.f32 %v1897_v59  ;;  %vm1972_vm9 = vmor %vm662_vm1, %vm663_vm5 }
  0xcf   :  { %v645_v21 = vmul.f32 %v1899_v62, %v644_v14  ;;  %1664 = vrcp.f32 %v1926_v24  ;;  %vm692_vm8 = vweird.f32 %v1901_v63  ;;  %v696_v53 = vand.u32 2147483647, %v1901_v63 }
  0xd0   :  { %v660_v26 = vmul.f32 %v1904_v1, %v659_v19  ;;  %1666 = vrcp.f32 %v1928_v25  ;;  %vm1976_vm10 = vcmp.eq.f32.partialorder %v681_v29, 8.507059e+37  ;;  %v684_v56 = vor.u32 1.1754944e-38, %v683_v34 }
  0xd1   :  { %v1937_v32 = vpop.eup %1656  ;;  %v646_v33 = vadd.f32 %v1899_v62, %v645_v21  ;;  %v699_v58 = vor.u32 1.1754944e-38, %v698_v35  ;;  %vm707_vm12 = vweird.f32 %v1926_v24  ;;  %v711_v5 = vand.u32 2147483647, %v1926_v24 }
  0xd2   :  { %v661_v39 = vadd.f32 %v1904_v1, %v660_v26  ;;  %v673_v42 = vmul.f32 %v1937_v32, %v1897_v59  ;;  %v1947_v44 = vpop.eup %1658  ;;  %vm678_vm11 = vweird.f32 %v1937_v32  ;;  %v713_v6 = vand.u32 2147483648, %v1926_v24 }
  0xd3   :  { %v1661_v48 = vpop.eup %1660  ;;  %v688_v51 = vmul.f32 %v1947_v44, %v1901_v63  ;;  %v650_v54 = vsel %vm1957_vm7, %v1899_v62, %v646_v33  ;;  %vm1994_vm13 = vcmp.eq.f32.partialorder %v696_v53, 8.507059e+37  ;;  %vm2005_vm14 = vmor %vm677_vm6, %vm678_vm11  ;;  %vm693_vm15 = vweird.f32 %v1947_v44 }
  0xd4   :  { %v674_v50 = vsub.f32 1.0, %v673_v42  ;;  %v1663_v60 = vpop.eup %1662  ;;  %v665_v61 = vsel %vm1972_vm9, %v1904_v1, %v661_v39  ;;  %v563_v0 = vpop.f32.mrf.mxu0  ;;  %v1988_v7 = vadd.f32 1.0, %v1661_v48  ;;  %v655_v8 = vsel %vm1922_vm2, %v654_v23, %v650_v54  ;;  %vm2033_vm3 = vmor %vm692_vm8, %vm693_vm15 }
  0xd5   :  { %v689_v45 = vsub.f32 1.0, %v688_v51  ;;  %v577_v2 = vpop.f32.mrf.mxu1  ;;  %v1665_v3 = vpop.eup %1664  ;;  %v670_v14 = vsel %vm1932_vm4, %v669_v40, %v665_v61  ;;  %v2011_v18 = vadd.f32 1.0, %v1663_v60  ;;  %vm2018_vm0 = vcmp.eq.f32.partialorder %v711_v5, 8.507059e+37 }
  0xd6   :  { %v675_v62 = vmul.f32 %v1937_v32, %v674_v50  ;;  %v703_v11 = vmul.f32 %v1665_v3, %v1926_v24  ;;  %v1667_v13 = vpop.eup %1666  ;;  %1668 = vrcp.f32 %v1988_v7  ;;  %vm722_vm1 = vweird.f32 %v1928_v25 }
  0xd7   :  { %v690_v9 = vmul.f32 %v1947_v44, %v689_v45  ;;  %v718_v22 = vmul.f32 %v1667_v13, %v1928_v25  ;;  %v726_v23 = vand.u32 2147483647, %v1928_v25  ;;  %v728_v26 = vand.u32 2147483648, %v1928_v25 }
  0xd8   :  { %v676_v1 = vadd.f32 %v1937_v32, %v675_v62  ;;  %v704_v21 = vsub.f32 1.0, %v703_v11  ;;  %v762_v29 = vmul.f32 %v655_v8, %v1867_v12  ;;  %vm708_vm2 = vweird.f32 %v1665_v3 }
  0xd9   :  { %v691_v20 = vadd.f32 %v1947_v44, %v690_v9  ;;  %v763_v34 = vmul.f32 %v670_v14, %v1869_v15  ;;  %v714_v38 = vor.u32 1.1754944e-38, %v713_v6  ;;  %1670 = vrcp.f32 %v2011_v18  ;;  %vm709_vm5 = vmor %vm707_vm12, %vm708_vm2 }
  0xda   :  { %v680_v19 = vsel %vm2005_vm14, %v1937_v32, %v676_v1  ;;  %v705_v33 = vmul.f32 %v1665_v3, %v704_v21  ;;  %v719_v32 = vsub.f32 1.0, %v718_v22  ;;  %vm723_vm4 = vweird.f32 %v1667_v13 }
  0xdb   :  { %v591_v28 = vpop.f32.mrf.mxu2  ;;  %v685_v35 = vsel %vm1976_vm10, %v684_v56, %v680_v19  ;;  %v695_v12 = vsel %vm2033_vm3, %v1947_v44, %v691_v20  ;;  %vm2043_vm6 = vcmp.eq.f32.partialorder %v726_v23, 8.507059e+37  ;;  %v729_v42 = vor.u32 1.1754944e-38, %v728_v26  ;;  %vm724_vm8 = vmor %vm722_vm1, %vm723_vm4 }
  0xdc   :  { %v706_v39 = vadd.f32 %v1665_v3, %v705_v33  ;;  %v720_v15 = vmul.f32 %v1667_v13, %v719_v32  ;;  %v1669_v40 = vpop.eup %1668  ;;  %v741_v48 = vand.u32 2147483647, %v1988_v7  ;;  %v564_v49 = vadd.f32 %v563_v0, %v160_v41  ;;  %v605_v50 = vpop.f32.mrf.mxu3 }
  0xdd   :  { %v733_v53 = vmul.f32 %v1669_v40, %v1988_v7  ;;  %vm737_vm7 = vweird.f32 %v1988_v7  ;;  %v565_v54 = vpop.f32.mrf.mxu0  ;;  %v579_v24 = vpop.f32.mrf.mxu1  ;;  %v764_v43 = vmul.f32 %v685_v35, %v1875_v27  ;;  %v700_v55 = vsel %vm1994_vm13, %v699_v58, %v695_v12 }
  0xde   :  { %v710_v51 = vsel %vm709_vm5, %v1665_v3, %v706_v39  ;;  %v721_v44 = vadd.f32 %v1667_v13, %v720_v15  ;;  %v743_v60 = vand.u32 2147483648, %v1988_v7  ;;  %v578_v0 = vadd.f32 %v577_v2, %v161_v16 }
  0xdf   :  { %v715_v56 = vsel %vm2018_vm0, %v714_v38, %v710_v51  ;;  %v734_v45 = vsub.f32 1.0, %v733_v53  ;;  %v1671_v27 = vpop.eup %1670  ;;  %vm2066_vm9 = vcmp.eq.f32.partialorder %v741_v48, 8.507059e+37  ;;  %v566_v25 = vadd.f32 %v565_v54, %v160_v41 }
  0xe0   :  { %v766_v61 = vmul.f32 %v715_v56, %v1879_v31  ;;  %v725_v62 = vsel %vm724_vm8, %v1667_v13, %v721_v44  ;;  %v580_v5 = vadd.f32 %v579_v24, %v161_v16  ;;  %vm738_vm10 = vweird.f32 %v1669_v40 }
  0xe1   :  { %v730_v58 = vsel %vm2043_vm6, %v729_v42, %v725_v62  ;;  %v735_v6 = vmul.f32 %v1669_v40, %v734_v45  ;;  %v748_v2 = vmul.f32 %v1671_v27, %v2011_v18  ;;  %v744_v8 = vor.u32 1.1754944e-38, %v743_v60  ;;  %vm739_vm11 = vmor %vm737_vm7, %vm738_vm10 }
  0xe2   :  { %v767_v31 = vmul.f32 %v730_v58, %v1882_v36  ;;  %v756_v1 = vand.u32 2147483647, %v2011_v18  ;;  %v770_v9 = vmul.f32 %v762_v29, %v564_v49  ;;  %v774_v10 = vmul.f32 %v766_v61, %v566_v25 }
  0xe3   :  { %v593_v11 = vpop.f32.mrf.mxu2  ;;  %v736_v13 = vadd.f32 %v1669_v40, %v735_v6  ;;  %v749_v14 = vsub.f32 1.0, %v748_v2  ;;  %v771_v17 = vmul.f32 %v763_v34, %v578_v0  ;;  %vm753_vm12 = vweird.f32 %v1671_v27 }
  0xe4   :  { %v775_v19 = vmul.f32 %v767_v31, %v580_v5  ;;  %v758_v36 = vand.u32 2147483648, %v2011_v18  ;;  %v592_v41 = vadd.f32 %v591_v28, %v162_v46  ;;  %v780_v16 = vpack.c.bf16 %v774_v10, %v770_v9  ;;  %v607_v26 = vpop.f32.mrf.mxu3 }
  0xe5   :  { %v740_v20 = vsel %vm739_vm11, %v1669_v40, %v736_v13  ;;  %v750_v21 = vmul.f32 %v1671_v27, %v749_v14  ;;  %v594_v59 = vadd.f32 %v593_v11, %v162_v46  ;;  %vm752_vm13 = vweird.f32 %v2011_v18 }
  0xe6   :  { %v781_v22 = vpack.c.bf16 %v775_v19, %v771_v17  ;;  %v745_v23 = vsel %vm2066_vm9, %v744_v8, %v740_v20  ;;  %1048 = vmatmul.bf16.vlgmr.msra.gmra.mxu0 %v780_v16  ;;  %v765_v28 = vmul.f32 %v700_v55, %v1877_v30  ;;  %vm754_vm14 = vmor %vm752_vm13, %vm753_vm12  ;;  %vm757_vm15 = vcmp.eq.f32.partialorder %v756_v1, 8.507059e+37 }
  0xe7   :  { %v768_v7 = vmul.f32 %v745_v23, %v1893_v52  ;;  %v751_v29 = vadd.f32 %v1671_v27, %v750_v21  ;;  %v759_v33 = vor.u32 1.1754944e-38, %v758_v36  ;;  %v606_v46 = vadd.f32 %v605_v50, %v163_v47 }
  0xe8   :  { %1062 = vmatmul.bf16.vlgmr.msra.gmra.mxu1 %v781_v22  ;;  %v772_v34 = vmul.f32 %v764_v43, %v592_v41  ;;  %v608_v37 = vadd.f32 %v607_v26, %v163_v47 }
  0xe9   :  { %v755_v32 = vsel %vm754_vm14, %v1671_v27, %v751_v29  ;;  %v776_v35 = vmul.f32 %v768_v7, %v594_v59  ;;  %v773_v12 = vmul.f32 %v765_v28, %v606_v46 }
  0xea   :  { %v760_v52 = vsel %vm757_vm15, %v759_v33, %v755_v32 }
  0xeb   :  { %v769_v38 = vmul.f32 %v760_v52, %v1895_v57  ;;  %v782_v18 = vpack.c.bf16 %v776_v35, %v772_v34 }
  0xed   :  { %v777_v39 = vmul.f32 %v769_v38, %v608_v37  ;;  %1076 = vmatmul.bf16.vlgmr.msra.gmra.mxu2 %v782_v18 }
  0xef   :  { %v783_v30 = vpack.c.bf16 %v777_v39, %v773_v12 }
  0xf1   :  { %1090 = vmatmul.bf16.vlgmr.msra.gmra.mxu3 %v783_v30 }
 0x163   :  { %v1049_v15 = vpop.f32.mrf.mxu0 }
 0x165   :  { %v1063_v40 = vpop.f32.mrf.mxu1 }
 0x166   :  { %v1064_v63 = vadd.f32 %v1063_v40, %v1049_v15 }
 0x16b   :  { %v1051_v49 = vpop.f32.mrf.mxu0 }
 0x16d   :  { %v1065_v50 = vpop.f32.mrf.mxu1 }
 0x16e   :  { %v1066_v57 = vadd.f32 %v1065_v50, %v1051_v49 }
 0x170   :  { %v1077_v42 = vpop.f32.mrf.mxu2 }
 0x171   :  { %v1078_v48 = vadd.f32 %v1077_v42, %v1064_v63 }
 0x174   :  { %v1091_v51 = vpop.f32.mrf.mxu3 }
 0x175   :  { %v1092_v44 = vadd.f32 %v1091_v51, %v1078_v48 }
 0x177   :  { %v1109_v53 = vadd.f32 %v1639_v4, %v1092_v44 }
 0x178   :  { %v1079_v47 = vpop.f32.mrf.mxu2 }
 0x179   :  { %v1080_v54 = vadd.f32 %v1079_v47, %v1066_v57  ;;  %1111 = vst [vmem:[#allocation10] sm:$0xff] %v1109_v53 }
 0x17c   :  { %v1093_v24 = vpop.f32.mrf.mxu3 }
 0x17d   :  { %v1094_v43 = vadd.f32 %v1093_v24, %v1080_v54 }
 0x17f   :  { %v1110_v55 = vadd.f32 %v1639_v4, %v1094_v43 }
 0x181   :  { %1112 = vst [vmem:[#allocation10 + $0x8] sm:$0xff] %v1110_v55 }
 0x182   :  { %1125 = dma.vmem_to_hbm [thread:$0]  %s1118_s16, 256, %s1120_s19, [#allocation4], %s1809_s20, %s1809_s20, %s1810_s21  }
 0x183   :  { %1798 = dma.done.wait [#allocation4], 256  }
 0x184   :  { %1799 = vsyncadd [#allocation4], 4294967040 }
 0x185   :  { %1130 = vsyncpa [#allocation3], 1 }
 0x186   :  { %1131 = vsyncpa [#allocation6], 1 }
 0x187   :  { %1132 = vsyncpa [#allocation9], 1 }
 0x188   :  { %1133 = vsyncpa [#allocation4], 1 }

</bundles_post_ra>
